<compile_context>
chip_gen: v7x
topology: tpu7x:2x2x1
jax: 0.10.0
libtpu: 0.0.40
codegen_flags: <defaults>
</compile_context>

<pallas_src>
import jax
import jax.numpy as jnp
from jax.experimental import pallas as pl
from jax.experimental.pallas import tpu as pltpu


def _round_up(n, m):
    return ((n + m - 1) // m) * m


def _vmem_budget_bytes():
    """~75% of physical VMEM (leaves headroom for compiler internal scratch)."""
    try:
        info = pltpu.get_tpu_info()
        cap = getattr(info, "vmem_capacity_bytes", None)
    except Exception:
        cap = None
    if cap is None:
        return 64 * 1024 * 1024          # safe fallback (ran clean previously)
    return min(int(cap) * 3 // 4, 112 * 1024 * 1024)


def ffn_kernel(x_ref, w1_ref, b1_ref, w2_ref, b2_ref, o_ref, *acc_scratch):
    """One (row-tile, d_ff-chunk) step of  y = relu(x@W1 + b1) @ W2 + b2."""
    # f32 outputs: accumulate in place in the resident output block (its
    # index_map ignores the reduction axis).  Otherwise use the f32 scratch.
    acc_ref = acc_scratch[0] if acc_scratch else o_ref
    k = pl.program_id(1)

    @pl.when(k == 0)
    def _():
        # Seed the accumulator with the output bias (saves a final add pass).
        acc_ref[...] = jnp.broadcast_to(
            b2_ref[...], acc_ref.shape).astype(acc_ref.dtype)

    # fc_1 chunk on the MXU (f32 accumulation).
    h = jnp.dot(x_ref[...], w1_ref[...], preferred_element_type=jnp.float32)
    # bias + ReLU epilogue in b1's dtype (bf16 on v6e/v7x halves VPU work).
    h = jnp.maximum(h.astype(b1_ref.dtype) + b1_ref[...], 0.0)
    # TODO(synk): dropout is identity here (eval mode).

    # fc_2 chunk, accumulated across the d_ff grid axis in f32.
    acc_ref[...] += jnp.dot(h.astype(w2_ref.dtype), w2_ref[...],
                            preferred_element_type=jnp.float32
                            ).astype(acc_ref.dtype)

    if acc_scratch:
        @pl.when(k == pl.num_programs(1) - 1)
        def _():
            o_ref[...] = acc_ref[...].astype(o_ref.dtype)


def prepare_ffn_params(w1, b1, w2, b2, *, tile_ff=1024,
                       compute_dtype=jnp.bfloat16, epilogue_dtype=None):
    """Pad / cast the static weights ONCE (keep out of the per-call hot path).

    w1: (d_model, d_ff)   b1: (d_ff,)
    w2: (d_ff, d_model)   b2: (d_model,)
    Weights are stored pre-transposed relative to nn.Linear so the kernel does
    row-major matmuls on the MXU.  Zero padding is exact: padded d_model cols
    of x / rows of W1 contribute 0; padded d_ff units have zero W1-cols, b1
    and W2-rows so relu(0)=0 contributes nothing; padded output rows/cols are
    sliced off.
    """
    d_model, d_ff = w1.shape
    epi_dtype = compute_dtype if epilogue_dtype is None else epilogue_dtype

    LANE = 128
    d_model_p = _round_up(d_model, LANE)
    tk = min(_round_up(tile_ff, LANE), _round_up(d_ff, LANE))
    d_ff_p = _round_up(d_ff, tk)

    def pad_cast(a, shape, dtype):
        a = a.astype(dtype)
        if a.shape == shape:
            return a
        return jnp.zeros(shape, dtype).at[
            tuple(slice(0, s) for s in a.shape)].set(a)

    return dict(
        w1=pad_cast(w1, (d_model_p, d_ff_p), compute_dtype),
        b1=pad_cast(b1.reshape(1, d_ff), (1, d_ff_p), epi_dtype),
        w2=pad_cast(w2, (d_ff_p, d_model_p), compute_dtype),
        b2=pad_cast(b2.reshape(1, d_model), (1, d_model_p), jnp.float32),
        d_model=d_model, d_ff=d_ff, d_model_p=d_model_p, d_ff_p=d_ff_p,
        tk=tk, compute_dtype=compute_dtype,
    )


def positionwise_ffn_apply(x, params, *, tile_rows=512):
    """FFN forward.  x: (batch, seq, d_model); params from prepare_ffn_params."""
    batch, seq, d_model = x.shape
    assert d_model == params["d_model"]
    rows = batch * seq
    out_dtype = x.dtype
    compute_dtype = params["compute_dtype"]
    d_model_p, d_ff_p, tk = params["d_model_p"], params["d_ff_p"], params["tk"]

    # Row tile: multiple of 16 (bf16 sublane packing), large by default
    # (weight streams amortize over tm).  Prefer >= 2 row tiles when there is
    # enough work so v7x's 2 TensorCores both get a share of the parallel axis.
    tm = min(_round_up(tile_rows, 16), _round_up(rows, 16))
    if rows >= 32:
        tm = min(tm, _round_up(-(-rows // 2), 16))
    rows_p = _round_up(rows, tm)

    x2d = x.reshape(rows, d_model).astype(compute_dtype)
    if (rows_p, d_model_p) != (rows, d_model):
        x2d = jnp.zeros((rows_p, d_model_p), compute_dtype
                        ).at[:rows, :d_model].set(x2d)

    grid = (rows_p // tm, d_ff_p // tk)
    n_row_tiles = grid[0]

    # f32 output -> accumulate directly into the output block (no scratch).
    accumulate_in_output = jnp.dtype(out_dtype) == jnp.dtype(jnp.float32)
    scratch_shapes = ([] if accumulate_in_output
                      else [pltpu.VMEM((tm, d_model_p), jnp.float32)])

    bytes_el = jnp.dtype(compute_dtype).itemsize
    cost = pl.CostEstimate(
        flops=4 * rows_p * d_model_p * d_ff_p,
        transcendentals=0,
        bytes_accessed=(rows_p * d_model_p * bytes_el
                        + n_row_tiles * (2 * d_model_p * d_ff_p * bytes_el
                                         + (d_ff_p + d_model_p) * 4)
                        + rows_p * d_model_p * jnp.dtype(out_dtype).itemsize),
    )

    out2d = pl.pallas_call(
        ffn_kernel,
        out_shape=jax.ShapeDtypeStruct((rows_p, d_model_p), out_dtype),
        grid_spec=pltpu.PrefetchScalarGridSpec(
            num_scalar_prefetch=0,
            grid=grid,
            in_specs=[
                pl.BlockSpec((tm, d_model_p), lambda i, k: (i, 0)),   # x rows
                pl.BlockSpec((d_model_p, tk), lambda i, k: (0, k)),   # W1 chunk
                pl.BlockSpec((1, tk), lambda i, k: (0, k)),           # b1 chunk
                pl.BlockSpec((tk, d_model_p), lambda i, k: (k, 0)),   # W2 chunk
                pl.BlockSpec((1, d_model_p), lambda i, k: (0, 0)),    # b2
            ],
            out_specs=pl.BlockSpec((tm, d_model_p), lambda i, k: (i, 0)),
            scratch_shapes=scratch_shapes,
        ),
        compiler_params=pltpu.CompilerParams(
            dimension_semantics=("parallel", "arbitrary"),
            vmem_limit_bytes=_vmem_budget_bytes(),
        ),
        cost_estimate=cost,
    )(x2d, params["w1"], params["b1"], params["w2"], params["b2"])

    return out2d[:rows, :d_model].reshape(batch, seq, d_model)


def positionwise_ffn(x, w1, b1, w2, b2, *, tile_rows=512, tile_ff=1024,
                     compute_dtype=jnp.bfloat16, epilogue_dtype=None):
    """Convenience wrapper (prefer preparing params once outside the hot loop)."""
    params = prepare_ffn_params(w1, b1, w2, b2, tile_ff=tile_ff,
                                compute_dtype=compute_dtype,
                                epilogue_dtype=epilogue_dtype)
    return positionwise_ffn_apply(x, params, tile_rows=tile_rows)


def ffn_reference(x, w1, b1, w2, b2):
    h = jnp.maximum(x @ w1 + b1, 0.0)
    return h @ w2 + b2


if __name__ == "__main__":
    # Small shapes consistent with the module's forward:
    # x: (batch, seq, d_model) = (2, 8, 32), d_ff = 64
    batch, seq, d_model, d_ff = 2, 8, 32, 64

    key = jax.random.PRNGKey(0)
    kx, k1, k2, k3, k4 = jax.random.split(key, 5)

    x = jax.random.normal(kx, (batch, seq, d_model), dtype=jnp.float32)
    # Parameters stored pre-transposed relative to nn.Linear for row-major matmul.
    w1 = jax.random.normal(k1, (d_model, d_ff), dtype=jnp.float32) * 0.1
    b1 = jax.random.normal(k2, (d_ff,), dtype=jnp.float32) * 0.1
    w2 = jax.random.normal(k3, (d_ff, d_model), dtype=jnp.float32) * 0.1
    b2 = jax.random.normal(k4, (d_model,), dtype=jnp.float32) * 0.1

    ref = ffn_reference(x, w1, b1, w2, b2)

    # Default path: bf16 MXU operands + bf16 epilogue, f32 accumulation,
    # f32 output (accumulates directly into the output block, no scratch).
    params = prepare_ffn_params(w1, b1, w2, b2)          # pad/cast weights once
    out = jax.block_until_ready(positionwise_ffn_apply(x, params))
    assert out.shape == (batch, seq, d_model)
    assert jnp.allclose(out, ref, atol=3e-2, rtol=3e-2), "bf16 path mismatch"

    # f32 compute path: tight numerical check of the kernel structure.
    params_f32 = prepare_ffn_params(w1, b1, w2, b2, compute_dtype=jnp.float32)
    out_f32 = jax.block_until_ready(positionwise_ffn_apply(x, params_f32))
    assert jnp.allclose(out_f32, ref, atol=1e-5, rtol=1e-5), "f32 path mismatch"

    # bf16 output path: exercises the scratch-accumulator kernel variant.
    out_bf16 = jax.block_until_ready(
        positionwise_ffn_apply(x.astype(jnp.bfloat16), params))
    assert out_bf16.dtype == jnp.bfloat16
    assert jnp.allclose(out_bf16.astype(jnp.float32), ref,
                        atol=5e-2, rtol=5e-2), "bf16-output path mismatch"

    print("KERNEL_OK")
</pallas_src>

<mosaic_0001>
module attributes {stable_mosaic.version = 11 : i64} {
  func.func @ffn_kernel(%arg0: i32, %arg1: i32, %arg2: memref<16x128xbf16, #tpu.memory_space<vmem>>, %arg3: memref<128x128xbf16, #tpu.memory_space<vmem>>, %arg4: memref<1x128xbf16, #tpu.memory_space<vmem>>, %arg5: memref<128x128xbf16, #tpu.memory_space<vmem>>, %arg6: memref<1x128xf32, #tpu.memory_space<vmem>>, %arg7: memref<16x128xf32, #tpu.memory_space<vmem>>) attributes {dimension_semantics = [#tpu.dimension_semantics<parallel>, #tpu.dimension_semantics<arbitrary>], iteration_bounds = array<i64: 1, 1>, scalar_prefetch = 0 : i64, scratch_operands = 0 : i64, tpu.core_type = #tpu.core_type<tc>, window_params = [{transform_indices = @transform_0, window_bounds = array<i64: 16, 128>}, {transform_indices = @transform_1, window_bounds = array<i64: 128, 128>}, {transform_indices = @transform_2, window_bounds = array<i64: 1, 128>}, {transform_indices = @transform_3, window_bounds = array<i64: 128, 128>}, {pipeline_mode = #tpu.pipeline_mode<synchronous>, transform_indices = @transform_4, window_bounds = array<i64: 1, 128>}, {transform_indices = @transform_5, window_bounds = array<i64: 16, 128>}]} {
    %c0_i32 = arith.constant 0 : i32
    %0 = arith.cmpi eq, %arg1, %c0_i32 : i32
    %1 = arith.extui %0 : i1 to i32
    %c0_i32_0 = arith.constant 0 : i32
    %2 = arith.cmpi ne, %1, %c0_i32_0 : i32
    scf.if %2 {
      %c0_14 = arith.constant 0 : index
      %c0_15 = arith.constant 0 : index
      %17 = vector.load %arg6[%c0_14, %c0_15] : memref<1x128xf32, #tpu.memory_space<vmem>>, vector<1x128xf32>
      %18 = vector.shape_cast %17 : vector<1x128xf32> to vector<1x128xf32>
      %19 = vector.broadcast %18 : vector<1x128xf32> to vector<16x128xf32>
      %c0_16 = arith.constant 0 : index
      %c0_17 = arith.constant 0 : index
      %20 = vector.load %arg7[%c0_16, %c0_17] : memref<16x128xf32, #tpu.memory_space<vmem>>, vector<16x128xf32>
      tpu.vector_store %arg7[%c0_16, %c0_17], %19 {strides = array<i32>} : memref<16x128xf32, #tpu.memory_space<vmem>>, vector<16x128xf32>,
    } else {
    }
    %c0 = arith.constant 0 : index
    %c0_1 = arith.constant 0 : index
    %3 = vector.load %arg2[%c0, %c0_1] : memref<16x128xbf16, #tpu.memory_space<vmem>>, vector<16x128xbf16>
    %c0_2 = arith.constant 0 : index
    %c0_3 = arith.constant 0 : index
    %4 = vector.load %arg3[%c0_2, %c0_3] : memref<128x128xbf16, #tpu.memory_space<vmem>>, vector<128x128xbf16>
    %cst = arith.constant dense<0.000000e+00> : vector<16x128xf32>
    %5 = tpu.matmul %3, %4, %cst {dimension_numbers = #tpu.dot_dimension_numbers<[1], [0], [0], [1], [0, 0, 1, 1], [], []>} : vector<16x128xbf16>, vector<128x128xbf16>, vector<16x128xf32> -> vector<16x128xf32>
    %6 = arith.truncf %5 : vector<16x128xf32> to vector<16x128xbf16>
    %c0_4 = arith.constant 0 : index
    %c0_5 = arith.constant 0 : index
    %7 = vector.load %arg4[%c0_4, %c0_5] : memref<1x128xbf16, #tpu.memory_space<vmem>>, vector<1x128xbf16>
    %8 = vector.broadcast %7 : vector<1x128xbf16> to vector<16x128xbf16>
    %9 = arith.addf %6, %8 : vector<16x128xbf16>
    %cst_6 = arith.constant 0.000000e+00 : bf16
    %10 = vector.broadcast %cst_6 : bf16 to vector<16x128xbf16>
    %11 = arith.maximumf %9, %10 : vector<16x128xbf16>
    %c0_7 = arith.constant 0 : index
    %c0_8 = arith.constant 0 : index
    %12 = vector.load %arg7[%c0_7, %c0_8] : memref<16x128xf32, #tpu.memory_space<vmem>>, vector<16x128xf32>
    %c0_9 = arith.constant 0 : index
    %c0_10 = arith.constant 0 : index
    %13 = vector.load %arg5[%c0_9, %c0_10] : memref<128x128xbf16, #tpu.memory_space<vmem>>, vector<128x128xbf16>
    %cst_11 = arith.constant dense<0.000000e+00> : vector<16x128xf32>
    %14 = tpu.matmul %11, %13, %cst_11 {dimension_numbers = #tpu.dot_dimension_numbers<[1], [0], [0], [1], [0, 0, 1, 1], [], []>} : vector<16x128xbf16>, vector<128x128xbf16>, vector<16x128xf32> -> vector<16x128xf32>
    %15 = arith.addf %12, %14 : vector<16x128xf32>
    %c0_12 = arith.constant 0 : index
    %c0_13 = arith.constant 0 : index
    %16 = vector.load %arg7[%c0_12, %c0_13] : memref<16x128xf32, #tpu.memory_space<vmem>>, vector<16x128xf32>
    tpu.vector_store %arg7[%c0_12, %c0_13], %15 {strides = array<i32>} : memref<16x128xf32, #tpu.memory_space<vmem>>, vector<16x128xf32>,
    return
  }
  func.func @transform_0(%arg0: i32, %arg1: i32) -> (i32, i32) {
    %c0_i32 = arith.constant 0 : i32
    %c0_i32_0 = arith.constant 0 : i32
    return %arg0, %c0_i32 : i32, i32
  }
  func.func @transform_1(%arg0: i32, %arg1: i32) -> (i32, i32) {
    %c0_i32 = arith.constant 0 : i32
    %c0_i32_0 = arith.constant 0 : i32
    return %c0_i32, %arg1 : i32, i32
  }
  func.func @transform_2(%arg0: i32, %arg1: i32) -> (i32, i32) {
    %c0_i32 = arith.constant 0 : i32
    %c0_i32_0 = arith.constant 0 : i32
    return %c0_i32, %arg1 : i32, i32
  }
  func.func @transform_3(%arg0: i32, %arg1: i32) -> (i32, i32) {
    %c0_i32 = arith.constant 0 : i32
    %c0_i32_0 = arith.constant 0 : i32
    return %arg1, %c0_i32 : i32, i32
  }
  func.func @transform_4(%arg0: i32, %arg1: i32) -> (i32, i32) {
    %c0_i32 = arith.constant 0 : i32
    %c0_i32_0 = arith.constant 0 : i32
    %c0_i32_1 = arith.constant 0 : i32
    return %c0_i32, %c0_i32_0 : i32, i32
  }
  func.func @transform_5(%arg0: i32, %arg1: i32) -> (i32, i32) {
    %c0_i32 = arith.constant 0 : i32
    %c0_i32_0 = arith.constant 0 : i32
    return %arg0, %c0_i32 : i32, i32
  }
}

</mosaic_0001>

<bundles_post_ra>
// kernel: tpu_custom_call.1
= control target key start
LH: loop header
LB: loop body
LE: loop exit
PB: predicated region body
PF: predicated region fallthrough
CT: control target
= control target key end

     0   :  { %10 = vsyncpa [#allocation3], 0  ;;  %s730_s0 = inlined_call_operand.hbm [shape: bf16[16,128], index: 0, kind: input, shape index: {}]   ;;  %s731_s1 = inlined_call_operand.hbm [shape: bf16[128,128], index: 1, kind: input, shape index: {}]   ;;  %s732_s2 = inlined_call_operand.hbm [shape: bf16[1,128], index: 2, kind: input, shape index: {}]   ;;  %s733_s3 = inlined_call_operand.hbm [shape: bf16[128,128], index: 3, kind: input, shape index: {}]   ;;  %s734_s4 = inlined_call_operand.hbm [shape: f32[1,128], index: 4, kind: input, shape index: {}]   ;;  %s735_s5 = inlined_call_operand.hbm [shape: f32[16,128], index: 5, kind: output, shape index: {}]  }
   0x1   :  { %11 = vsyncpa [#allocation6], 0 }
   0x2   :  { %12 = vsyncpa [#allocation9], 0 }
   0x3   :  { %13 = vsyncpa [#allocation4], 0  ;;  %s599_s18 = smov [#allocation5]   ;;  %s600_s20 = smov [#allocation8]  }
   0x4   :  { %s31_s19 = sshll.u32 %s599_s18, 4  ;;  %s53_s21 = sshll.u32 %s600_s20, 4  ;;  %s32_s19 = int_to_ptr.vmem [resolvable:$true] %s31_s19  ;;  %s642_s21 = int_to_ptr.vmem [resolvable:$true] %s53_s21 }
   0x5   :  { %s459_s24 = scalar_lea.hbm %s731_s1, 1024 }
   0x6   :  { %p460_p0 = scmp.ne.s32.totalorder %s731_s1, %s459_s24  ;;  %p463_p1 = scmp.lt.u32.totalorder %s459_s24, %s731_s1 }
   0x8   :  { %p465_p2 = pnand %p463_p1, %p460_p0 }
   0xa   :  { %468 = shalt.err (!%p465_p2)
}
   0xb   :  { %s469_s29 = scalar_lea.vmem %s32_s19, 1024  ;;  %p474_p4 = scmp.lt.s32.totalorder %s32_s19, %s32_s19 }
   0xc   :  { %p470_p3 = scmp.ne.s32.totalorder %s32_s19, %s469_s29  ;;  %p475_p5 = scmp.lt.s32.totalorder %s469_s29, %s469_s29 }
   0xe   :  { %p476_p6 = por %p475_p5, %p474_p4 }
  0x10   :  { %p477_p7 = pnand %p476_p6, %p470_p3 }
  0x12   :  { %480 = shalt.err (!%p477_p7)
}
  0x13   :  { %s601_s30 = smov 64   ;;  %s602_s6 = smov 4  }
  0x14   :  { %37 = dma.hbm_to_vmem [thread:$0]  %s731_s1, 1024, %s32_s19, [#allocation6], %s601_s30, %s601_s30, %s602_s6  }
  0x15   :  { %s481_s11 = scalar_lea.hbm %s733_s3, 1024 }
  0x16   :  { %p482_p8 = scmp.ne.s32.totalorder %s733_s3, %s481_s11  ;;  %p485_p9 = scmp.lt.u32.totalorder %s481_s11, %s733_s3 }
  0x18   :  { %p487_p10 = pnand %p485_p9, %p482_p8 }
  0x1a   :  { %490 = shalt.err (!%p487_p10)
}
  0x1b   :  { %s491_s16 = scalar_lea.vmem %s642_s21, 1024  ;;  %p496_p12 = scmp.lt.s32.totalorder %s642_s21, %s642_s21 }
  0x1c   :  { %p492_p11 = scmp.ne.s32.totalorder %s642_s21, %s491_s16  ;;  %p497_p13 = scmp.lt.s32.totalorder %s491_s16, %s491_s16 }
  0x1e   :  { %p498_p0 = por %p497_p13, %p496_p12 }
  0x20   :  { %p499_p1 = pnand %p498_p0, %p492_p11 }
  0x22   :  { %502 = shalt.err (!%p499_p1)
}
  0x23   :  { %59 = dma.hbm_to_vmem [thread:$0]  %s733_s3, 1024, %s642_s21, [#allocation9], %s601_s30, %s601_s30, %s602_s6  }
  0x24   :  { %s603_s18 = smov [#allocation2]   ;;  %s604_s20 = smov [#allocation7]  }
  0x25   :  { %s19_s19 = sshll.u32 %s603_s18, 4  ;;  %s44_s22 = sshll.u32 %s604_s20, 4  ;;  %s20_s19 = int_to_ptr.vmem [resolvable:$true] %s19_s19  ;;  %s45_s22 = int_to_ptr.vmem [resolvable:$true] %s44_s22 }
  0x26   :  { %s503_s25 = scalar_lea.hbm %s730_s0, 128 }
  0x27   :  { %p504_p2 = scmp.ne.s32.totalorder %s730_s0, %s503_s25  ;;  %p507_p3 = scmp.lt.u32.totalorder %s503_s25, %s730_s0 }
  0x29   :  { %p509_p4 = pnand %p507_p3, %p504_p2 }
  0x2b   :  { %512 = shalt.err (!%p509_p4)
}
  0x2c   :  { %s513_s3 = scalar_lea.vmem %s20_s19, 128  ;;  %p518_p6 = scmp.lt.s32.totalorder %s20_s19, %s20_s19 }
  0x2d   :  { %p514_p5 = scmp.ne.s32.totalorder %s20_s19, %s513_s3  ;;  %p519_p7 = scmp.lt.s32.totalorder %s513_s3, %s513_s3 }
  0x2f   :  { %p520_p8 = por %p519_p7, %p518_p6 }
  0x31   :  { %p521_p9 = pnand %p520_p8, %p514_p5 }
  0x33   :  { %524 = shalt.err (!%p521_p9)
}
  0x34   :  { %25 = dma.hbm_to_vmem [thread:$0]  %s730_s0, 128, %s20_s19, [#allocation3], %s601_s30, %s601_s30, %s602_s6  }
  0x35   :  { %s525_s10 = scalar_lea.hbm %s732_s2, 16 }
  0x36   :  { %p526_p10 = scmp.ne.s32.totalorder %s732_s2, %s525_s10  ;;  %p529_p11 = scmp.lt.u32.totalorder %s525_s10, %s732_s2 }
  0x38   :  { %p531_p12 = pnand %p529_p11, %p526_p10 }
  0x3a   :  { %534 = shalt.err (!%p531_p12)
}
  0x3b   :  { %s535_s15 = scalar_lea.vmem %s45_s22, 16  ;;  %s539_s16 = scalar_lea.vmem %s45_s22, 32 }
  0x3c   :  { %p536_p13 = scmp.ne.s32.totalorder %s45_s22, %s535_s15  ;;  %p540_p0 = scmp.lt.s32.totalorder %s45_s22, %s45_s22 }
  0x3d   :  { %p541_p1 = scmp.lt.s32.totalorder %s539_s16, %s535_s15 }
  0x3f   :  { %p542_p2 = por %p541_p1, %p540_p0 }
  0x41   :  { %p543_p3 = pnand %p542_p2, %p536_p13 }
  0x43   :  { %546 = shalt.err (!%p543_p3)
}
  0x44   :  { %47 = dma.hbm_to_vmem [thread:$0]  %s732_s2, 16, %s45_s22, [#allocation6]  }
  0x45   :  { %s605_s6 = smov [#allocation10]   ;;  %s547_s19 = scalar_lea.hbm %s734_s4, 16 }
  0x46   :  { %s66_s1 = sshll.u32 %s605_s6, 4  ;;  %p548_p4 = scmp.ne.s32.totalorder %s734_s4, %s547_s19  ;;  %s67_s1 = int_to_ptr.vmem [resolvable:$true] %s66_s1 }
  0x47   :  { %p551_p5 = scmp.lt.u32.totalorder %s547_s19, %s734_s4 }
  0x49   :  { %p553_p6 = pnand %p551_p5, %p548_p4 }
  0x4b   :  { %556 = shalt.err (!%p553_p6)
}
  0x4c   :  { %s557_s26 = scalar_lea.vmem %s67_s1, 16  ;;  %s561_s2 = scalar_lea.vmem %s67_s1, 32 }
  0x4d   :  { %p558_p7 = scmp.ne.s32.totalorder %s67_s1, %s557_s26  ;;  %p562_p8 = scmp.lt.s32.totalorder %s67_s1, %s67_s1 }
  0x4e   :  { %p563_p9 = scmp.lt.s32.totalorder %s561_s2, %s557_s26 }
  0x50   :  { %p564_p10 = por %p563_p9, %p562_p8 }
  0x52   :  { %p565_p11 = pnand %p564_p10, %p558_p7 }
  0x54   :  { %568 = shalt.err (!%p565_p11)
}
  0x55   :  { %69 = dma.hbm_to_vmem [thread:$0]  %s734_s4, 16, %s67_s1, [#allocation9]  }
  0x56   :  { %591 = dma.done.wait [#allocation3], 128  }
  0x57   :  { %592 = vsyncadd [#allocation3], 4294967168 }
  0x58   :  { %593 = dma.done.wait [#allocation6], 1040  }
  0x59   :  { %594 = vsyncadd [#allocation6], 4294966256 }
  0x5a   :  { %595 = dma.done.wait [#allocation9], 1040  }
  0x5b   :  { %596 = vsyncadd [#allocation9], 4294966256  ;;  %v606_v0 = vmov 0.0   ;;  %vm607_vm0 = vmmov 0   ;;  %v442_v1 = vld [vmem:[#allocation5] sm:$0xff]   ;;  %v443_v2 = vld [vmem:[#allocation5 + $0x8] sm:$0xff]   ;;  %v217_v18 = vlaneseq }
  0x5c   :  { %389 = vmatprep.subr.bf16.mxu0 %v606_v0  ;;  %405 = vmatprep.mubr.msk.bf16.mxu0 %vm607_vm0, %v606_v0  ;;  %v444_v3 = vld [vmem:[#allocation5 + $0x10] sm:$0xff]   ;;  %v451_v4 = vld [vmem:[#allocation8] sm:$0xff]   ;;  %v445_v5 = vld [vmem:[#allocation5 + $0x18] sm:$0xff]   ;;  %v608_v30 = vmov 0   ;;  %s609_s4 = smov [#allocation11]  }
  0x5d   :  { %409 = vmatprep.subr.bf16.mxu1 %v606_v0  ;;  %425 = vmatprep.mubr.msk.bf16.mxu1 %vm607_vm0, %v606_v0  ;;  %v452_v6 = vld [vmem:[#allocation8 + $0x8] sm:$0xff]   ;;  %v446_v7 = vld [vmem:[#allocation5 + $0x20] sm:$0xff]   ;;  %v453_v8 = vld [vmem:[#allocation8 + $0x10] sm:$0xff]   ;;  %v218_v19 = vshrl.u32 %v217_v18, 7  ;;  %s339_s28 = sshll.u32 %s609_s4, 4  ;;  %s340_s28 = int_to_ptr.vmem [resolvable:$true] %s339_s28 }
  0x5e   :  { %390 = vmatpush3.bf16.msra.mxu0 %v442_v1  ;;  %410 = vmatpush3.bf16.msra.mxu1 %v451_v4  ;;  %v447_v9 = vld [vmem:[#allocation5 + $0x28] sm:$0xff]   ;;  %v454_v10 = vld [vmem:[#allocation8 + $0x18] sm:$0xff]   ;;  %v448_v11 = vld [vmem:[#allocation5 + $0x30] sm:$0xff]   ;;  %s569_s29 = scalar_lea.vmem %s340_s28, 256  ;;  %p574_p13 = scmp.lt.s32.totalorder %s340_s28, %s340_s28 }
  0x5f   :  { %391 = vmatprep.subr.bf16.mxu0 %v606_v0  ;;  %411 = vmatprep.subr.bf16.mxu1 %v606_v0  ;;  %v455_v12 = vld [vmem:[#allocation8 + $0x20] sm:$0xff]   ;;  %v449_v13 = vld [vmem:[#allocation5 + $0x38] sm:$0xff]   ;;  %v456_v14 = vld [vmem:[#allocation8 + $0x28] sm:$0xff]   ;;  %v219_v22 = vsub.s32 0, %v218_v19  ;;  %p570_p12 = scmp.ne.s32.totalorder %s340_s28, %s569_s29  ;;  %p575_p0 = scmp.lt.s32.totalorder %s569_s29, %s569_s29 }
  0x60   :  { %v450_v15 = vld [vmem:[#allocation2] sm:$0xff]   ;;  %v213_v20 = vld [vmem:[#allocation7] sm:$0x1]  ;;  %v353_v32 = vld [vmem:[#allocation10] ss:$0 sm:$0xff] }
  0x61   :  { %v457_v16 = vld [vmem:[#allocation8 + $0x30] sm:$0xff]   ;;  %v458_v17 = vld [vmem:[#allocation8 + $0x38] sm:$0xff]   ;;  %v215_v21 = vpack.i.b16 %v213_v20, %v213_v20  ;;  %p576_p1 = por %p575_p0, %p574_p13 }
  0x62   :  { %392 = vmatpush3.bf16.msra.mxu0 %v443_v2  ;;  %412 = vmatpush3.bf16.msra.mxu1 %v452_v6 }
  0x63   :  { %393 = vmatprep.subr.bf16.mxu0 %v606_v0  ;;  %413 = vmatprep.subr.bf16.mxu1 %v606_v0  ;;  %v220_v25 = vrot.slane %v215_v21, %v219_v22  ;;  %p577_p2 = pnand %p576_p1, %p570_p12 }
  0x66   :  { %394 = vmatpush3.bf16.msra.mxu0 %v444_v3  ;;  %414 = vmatpush3.bf16.msra.mxu1 %v453_v8 }
  0x67   :  { %395 = vmatprep.subr.bf16.mxu0 %v606_v0  ;;  %415 = vmatprep.subr.bf16.mxu1 %v606_v0 }
  0x6a   :  { %396 = vmatpush3.bf16.msra.mxu0 %v445_v5  ;;  %416 = vmatpush3.bf16.msra.mxu1 %v454_v10 }
  0x6b   :  { %397 = vmatprep.subr.bf16.mxu0 %v606_v0  ;;  %417 = vmatprep.subr.bf16.mxu1 %v606_v0 }
  0x6e   :  { %398 = vmatpush3.bf16.msra.mxu0 %v446_v7  ;;  %418 = vmatpush3.bf16.msra.mxu1 %v455_v12 }
  0x6f   :  { %399 = vmatprep.subr.bf16.mxu0 %v606_v0  ;;  %419 = vmatprep.subr.bf16.mxu1 %v606_v0 }
  0x72   :  { %400 = vmatpush3.bf16.msra.mxu0 %v447_v9  ;;  %420 = vmatpush3.bf16.msra.mxu1 %v456_v14 }
  0x73   :  { %401 = vmatprep.subr.bf16.mxu0 %v606_v0  ;;  %421 = vmatprep.subr.bf16.mxu1 %v606_v0 }
  0x76   :  { %402 = vmatpush3.bf16.msra.mxu0 %v448_v11  ;;  %422 = vmatpush3.bf16.msra.mxu1 %v457_v16 }
  0x77   :  { %403 = vmatprep.subr.bf16.mxu0 %v606_v0  ;;  %423 = vmatprep.subr.bf16.mxu1 %v606_v0 }
  0x7a   :  { %404 = vmatpush3.bf16.msra.mxu0 %v449_v13  ;;  %424 = vmatpush3.bf16.msra.mxu1 %v458_v17 }
  0x7d   :  { %406 = vmatmul.mubr.bf16.vlgmr.msra.gmra.mrb[0].mxu0 %v450_v15 }
 0x150   :  { %v205_v23 = vpop.f32.mrb[0].mxu0 }
 0x151   :  { %v407_v24 = vpop.f32.mrb[1].mxu0 }
 0x152   :  { %v208_v26 = vpop.f32.mrb[2].mxu0 }
 0x153   :  { %v212_v27 = vpack.c.bf16 %v208_v26, %v205_v23  ;;  %v408_v28 = vpop.f32.mrb[3].mxu0 }
 0x155   :  { %v221_v29 = vadd.bf16 %v220_v25, %v212_v27 }
 0x157   :  { %v222_v31 = vmax.bf16 %v608_v30, %v221_v29 }
 0x159   :  { %426 = vmatmul.mubr.bf16.vlgmr.msra.gmra.mrb[0].mxu1 %v222_v31 }
 0x22c   :  { %v323_v33 = vpop.f32.mrb[0].mxu1 }
 0x22d   :  { %v330_v34 = vadd.f32 %v353_v32, %v323_v33  ;;  %v427_v35 = vpop.f32.mrb[1].mxu1 }
 0x22e   :  { %v326_v36 = vpop.f32.mrb[2].mxu1 }
 0x22f   :  { %332 = vst [vmem:[#allocation11] sm:$0xff] %v330_v34  ;;  %v331_v37 = vadd.f32 %v353_v32, %v326_v36  ;;  %v428_v38 = vpop.f32.mrb[3].mxu1 }
 0x231   :  { %333 = vst [vmem:[#allocation11 + $0x8] sm:$0xff] %v331_v37 }
 0x232   :  { %580 = shalt.err (!%p577_p2)
}
 0x233   :  { %s581_s7 = scalar_lea.hbm %s735_s5, 256 }
 0x234   :  { %p582_p3 = scmp.ne.s32.totalorder %s735_s5, %s581_s7  ;;  %p585_p4 = scmp.lt.u32.totalorder %s581_s7, %s735_s5 }
 0x236   :  { %p587_p5 = pnand %p585_p4, %p582_p3 }
 0x238   :  { %590 = shalt.err (!%p587_p5)
}
 0x239   :  { %s610_s12 = smov 128   ;;  %s611_s13 = smov 8  }
 0x23a   :  { %345 = dma.vmem_to_hbm [thread:$0]  %s340_s28, 256, %s735_s5, [#allocation4], %s610_s12, %s610_s12, %s611_s13  }
 0x23b   :  { %597 = dma.done.wait [#allocation4], 256  }
 0x23c   :  { %598 = vsyncadd [#allocation4], 4294967040 }
 0x23d   :  { %349 = vsyncpa [#allocation3], 1 }
 0x23e   :  { %350 = vsyncpa [#allocation6], 1 }
 0x23f   :  { %351 = vsyncpa [#allocation9], 1 }
 0x240   :  { %352 = vsyncpa [#allocation4], 1 }

</bundles_post_ra>
